<compile_context>
chip_gen: v6e
topology: v6e:2x2x1
jax: 0.10.0
libtpu: 0.0.40
codegen_flags: <defaults>
</compile_context>

<pallas_src>
import jax
import jax.numpy as jnp
from jax.experimental import pallas as pl
from jax.experimental.pallas import tpu as pltpu


def _deconv_kernel(x_ref, w_ref, b_ref, o_ref):
    # x_ref: (Cin, th, 2W)        x_rep tile (lane l = 2*w + kw, value = x[.., h, w])
    # w_ref: (Cin, 2*Cout, 2W)    row q = kh*Cout + co, lane l -> W[ci, co, kh, l % 2]
    # b_ref: (2*Cout, 1, 1)       row q -> bias[co]
    # o_ref: (Cout, th, 4W)       free view of NCHW: lanes [0,2W) -> out row 2h,
    #                                                lanes [2W,4W) -> out row 2h+1
    cin, th, w2 = x_ref.shape
    r2 = w_ref.shape[1]
    cout = r2 // 2

    x = x_ref[...]
    w = w_ref[...]
    acc = jnp.broadcast_to(b_ref[...], (r2, th, w2)).astype(jnp.float32)
    # Unrolled VPU FMA over the tiny contraction dim (exact f32, MXU left idle).
    for ci in range(cin):
        acc = acc + x[ci][None, :, :] * w[ci][:, None, :]

    o_ref[:, :, :w2] = acc[:cout].astype(o_ref.dtype)    # kh = 0 half of the row pair
    o_ref[:, :, w2:] = acc[cout:].astype(o_ref.dtype)    # kh = 1 half of the row pair


def _round_up(a, m):
    return -(-a // m) * m


def _choose_row_tile(n_batch, h, cin, cout, w,
                     target_bytes=6 * 1024 * 1024, min_steps=4):
    """Input rows per grid step.

    * ~6 MB of (in + out) tile per step (single copy) so per-step overhead is amortized
      and DMAs run long enough to reach peak HBM bandwidth,
    * multiple of 8 (last-two-dims rule) unless it covers the full H extent,
    * keeps >= min_steps total grid steps when possible so v7x's two TensorCores both
      get work,
    * double-buffered tiles stay far inside the 48 MiB scoped VMEM limit used below
      (safe on v5e / v6e / v7x).
    """
    lane_in = _round_up(max(2 * w, 1), 128)     # VMEM lane padding of the x_rep tile
    lane_out = _round_up(max(4 * w, 1), 128)    # VMEM lane padding of the out tile
    row_bytes = 4 * (cin * lane_in + cout * lane_out)
    th = max(1, target_bytes // row_bytes)
    if th >= h:
        th = h                                   # full-extent block: always legal
    else:
        th = max(8, (th // 8) * 8)
    while th > 8 and n_batch * ((h + th - 1) // th) < min_steps:
        nxt = max(8, ((th // 2) // 8) * 8)
        if nxt == th:
            break
        th = nxt
    return min(th, h)


def deconv_block(x_nchw, weight, bias):
    """ConvTranspose2d(in_c, out_c, kernel_size=2, stride=2, padding=0).

    x_nchw : (N, Cin, H, W)      float32
    weight : (Cin, Cout, 2, 2)   float32   (PyTorch ConvTranspose2d layout)
    bias   : (Cout,)             float32
    returns: (N, Cout, 2H, 2W)   float32
    """
    N, Cin, H, W = x_nchw.shape
    Cout = weight.shape[1]

    # ---- small, input-sized preprocessing (all output-sized work stays in the kernel) ----
    # Lane repeat of the (small) input: x_rep[n, ci, h, 2w+kw] = x[n, ci, h, w].
    x_rep = jnp.repeat(x_nchw, 2, axis=-1)                               # (N, Cin, H, 2W)
    # Lane-parity weight selector: wsel[ci, kh*Cout+co, 2w+kw] = W[ci, co, kh, kw].
    w_row = jnp.transpose(weight, (0, 2, 1, 3)).reshape(Cin, 2 * Cout, 2)
    wsel = jnp.tile(w_row, (1, 1, W))                                    # (Cin, 2*Cout, 2W)
    b3 = jnp.tile(bias, 2).reshape(2 * Cout, 1, 1)                       # rows = kh*Cout+co

    th = _choose_row_tile(N, H, Cin, Cout, W)
    n_h = pl.cdiv(H, th)

    cost = pl.CostEstimate(
        flops=2 * N * Cin * Cout * 4 * H * W,
        transcendentals=0,
        bytes_accessed=4 * (N * Cin * H * 2 * W            # x_rep read
                            + Cin * 2 * Cout * 2 * W       # wsel (read once)
                            + 2 * Cout                     # bias
                            + N * Cout * 4 * H * W),       # output write
    )

    # Output is produced directly in the NCHW byte layout via the free view
    # (N, Cout, H, 4W): row h holds [out row 2h (2W) | out row 2h+1 (2W)].
    out4 = pl.pallas_call(
        _deconv_kernel,
        out_shape=jax.ShapeDtypeStruct((N, Cout, H, 4 * W), x_nchw.dtype),
        grid_spec=pltpu.PrefetchScalarGridSpec(
            num_scalar_prefetch=0,
            grid=(N, n_h),
            in_specs=[
                pl.BlockSpec((None, Cin, th, 2 * W), lambda n, i: (n, 0, i, 0)),
                pl.BlockSpec((Cin, 2 * Cout, 2 * W), lambda n, i: (0, 0, 0)),
                pl.BlockSpec((2 * Cout, 1, 1), lambda n, i: (0, 0, 0)),
            ],
            out_specs=pl.BlockSpec((None, Cout, th, 4 * W), lambda n, i: (n, 0, i, 0)),
        ),
        compiler_params=pltpu.CompilerParams(
            dimension_semantics=("parallel", "parallel"),
            vmem_limit_bytes=48 * 1024 * 1024,
        ),
        cost_estimate=cost,
    )(x_rep, wsel, b3)

    # Contiguous reshape only (no transpose, no data movement): (N,Cout,H,4W)->(N,Cout,2H,2W).
    return out4.reshape(N, Cout, 2 * H, 2 * W)


def _reference_deconv(x_nchw, weight, bias):
    """Pure-JAX reference of ConvTranspose2d(k=2, s=2, p=0) for validation."""
    N, Cin, H, W = x_nchw.shape
    Cout = weight.shape[1]
    patches = jnp.einsum("nchw,cokl->nhwklo", x_nchw, weight,
                         precision=jax.lax.Precision.HIGHEST)     # (N,H,W,2,2,Cout)
    out = jnp.transpose(patches, (0, 5, 1, 3, 2, 4)).reshape(N, Cout, 2 * H, 2 * W)
    return out + bias[None, :, None, None]


if __name__ == "__main__":
    key = jax.random.PRNGKey(0)
    k_x, k_w, k_b = jax.random.split(key, 3)

    # Small shapes consistent with DeconvBlock(in_c=4, out_c=8)
    N, Cin, H, W = 2, 4, 16, 16
    Cout = 8

    x = jax.random.normal(k_x, (N, Cin, H, W), dtype=jnp.float32)

    fan_in = Cin * 2 * 2
    bound = 1.0 / (fan_in ** 0.5)
    weight = jax.random.uniform(k_w, (Cin, Cout, 2, 2), jnp.float32, -bound, bound)
    bias = jax.random.uniform(k_b, (Cout,), jnp.float32, -bound, bound)

    fn = jax.jit(deconv_block)
    out = jax.block_until_ready(fn(x, weight, bias))

    ref = _reference_deconv(x, weight, bias)
    assert out.shape == (N, Cout, 2 * H, 2 * W), out.shape
    assert jnp.allclose(out, ref, atol=1e-5, rtol=1e-5), "mismatch vs reference"

    print("KERNEL_OK")
</pallas_src>

<mosaic_0001>
module attributes {stable_mosaic.version = 11 : i64} {
  func.func @_deconv_kernel(%arg0: i32, %arg1: i32, %arg2: memref<1x4x8x32xf32, #tpu.memory_space<vmem>>, %arg3: memref<4x16x32xf32, #tpu.memory_space<vmem>>, %arg4: memref<16x1x1xf32, #tpu.memory_space<vmem>>, %arg5: memref<1x8x8x64xf32, #tpu.memory_space<vmem>>) attributes {dimension_semantics = [#tpu.dimension_semantics<parallel>, #tpu.dimension_semantics<parallel>], iteration_bounds = array<i64: 2, 2>, scalar_prefetch = 0 : i64, scratch_operands = 0 : i64, tpu.core_type = #tpu.core_type<tc>, window_params = [{transform_indices = @transform_0, window_bounds = array<i64: 1, 4, 8, 32>}, {pipeline_mode = #tpu.pipeline_mode<synchronous>, transform_indices = @transform_1, window_bounds = array<i64: 4, 16, 32>}, {pipeline_mode = #tpu.pipeline_mode<synchronous>, transform_indices = @transform_2, window_bounds = array<i64: 16, 1, 1>}, {transform_indices = @transform_3, window_bounds = array<i64: 1, 8, 8, 64>}]} {
    %c0 = arith.constant 0 : index
    %c0_0 = arith.constant 0 : index
    %c0_1 = arith.constant 0 : index
    %c0_2 = arith.constant 0 : index
    %0 = vector.load %arg2[%c0, %c0_0, %c0_1, %c0_2] : memref<1x4x8x32xf32, #tpu.memory_space<vmem>>, vector<1x4x8x32xf32>
    %1 = vector.shape_cast %0 : vector<1x4x8x32xf32> to vector<4x8x32xf32>
    %c0_3 = arith.constant 0 : index
    %c0_4 = arith.constant 0 : index
    %c0_5 = arith.constant 0 : index
    %2 = vector.load %arg3[%c0_3, %c0_4, %c0_5] : memref<4x16x32xf32, #tpu.memory_space<vmem>>, vector<4x16x32xf32>
    %c0_6 = arith.constant 0 : index
    %c0_7 = arith.constant 0 : index
    %c0_8 = arith.constant 0 : index
    %3 = vector.load %arg4[%c0_6, %c0_7, %c0_8] : memref<16x1x1xf32, #tpu.memory_space<vmem>>, vector<16x1x1xf32>
    %4 = vector.shape_cast %3 : vector<16x1x1xf32> to vector<16x1x1xf32>
    %5 = vector.broadcast %4 : vector<16x1x1xf32> to vector<16x8x32xf32>
    %6 = vector.extract_strided_slice %1 {offsets = [0, 0, 0], sizes = [1, 8, 32], strides = [1, 1, 1]} : vector<4x8x32xf32> to vector<1x8x32xf32>
    %7 = vector.shape_cast %6 : vector<1x8x32xf32> to vector<8x32xf32>
    %8 = vector.shape_cast %7 : vector<8x32xf32> to vector<1x8x32xf32>
    %9 = vector.extract_strided_slice %2 {offsets = [0, 0, 0], sizes = [1, 16, 32], strides = [1, 1, 1]} : vector<4x16x32xf32> to vector<1x16x32xf32>
    %10 = vector.shape_cast %9 : vector<1x16x32xf32> to vector<16x32xf32>
    %11 = vector.shape_cast %10 : vector<16x32xf32> to vector<16x1x32xf32>
    %12 = vector.broadcast %8 : vector<1x8x32xf32> to vector<16x8x32xf32>
    %13 = vector.broadcast %11 : vector<16x1x32xf32> to vector<16x8x32xf32>
    %14 = arith.mulf %12, %13 : vector<16x8x32xf32>
    %15 = arith.addf %5, %14 : vector<16x8x32xf32>
    %16 = vector.extract_strided_slice %1 {offsets = [1, 0, 0], sizes = [1, 8, 32], strides = [1, 1, 1]} : vector<4x8x32xf32> to vector<1x8x32xf32>
    %17 = vector.shape_cast %16 : vector<1x8x32xf32> to vector<8x32xf32>
    %18 = vector.shape_cast %17 : vector<8x32xf32> to vector<1x8x32xf32>
    %19 = vector.extract_strided_slice %2 {offsets = [1, 0, 0], sizes = [1, 16, 32], strides = [1, 1, 1]} : vector<4x16x32xf32> to vector<1x16x32xf32>
    %20 = vector.shape_cast %19 : vector<1x16x32xf32> to vector<16x32xf32>
    %21 = vector.shape_cast %20 : vector<16x32xf32> to vector<16x1x32xf32>
    %22 = vector.broadcast %18 : vector<1x8x32xf32> to vector<16x8x32xf32>
    %23 = vector.broadcast %21 : vector<16x1x32xf32> to vector<16x8x32xf32>
    %24 = arith.mulf %22, %23 : vector<16x8x32xf32>
    %25 = arith.addf %15, %24 : vector<16x8x32xf32>
    %26 = vector.extract_strided_slice %1 {offsets = [2, 0, 0], sizes = [1, 8, 32], strides = [1, 1, 1]} : vector<4x8x32xf32> to vector<1x8x32xf32>
    %27 = vector.shape_cast %26 : vector<1x8x32xf32> to vector<8x32xf32>
    %28 = vector.shape_cast %27 : vector<8x32xf32> to vector<1x8x32xf32>
    %29 = vector.extract_strided_slice %2 {offsets = [2, 0, 0], sizes = [1, 16, 32], strides = [1, 1, 1]} : vector<4x16x32xf32> to vector<1x16x32xf32>
    %30 = vector.shape_cast %29 : vector<1x16x32xf32> to vector<16x32xf32>
    %31 = vector.shape_cast %30 : vector<16x32xf32> to vector<16x1x32xf32>
    %32 = vector.broadcast %28 : vector<1x8x32xf32> to vector<16x8x32xf32>
    %33 = vector.broadcast %31 : vector<16x1x32xf32> to vector<16x8x32xf32>
    %34 = arith.mulf %32, %33 : vector<16x8x32xf32>
    %35 = arith.addf %25, %34 : vector<16x8x32xf32>
    %36 = vector.extract_strided_slice %1 {offsets = [3, 0, 0], sizes = [1, 8, 32], strides = [1, 1, 1]} : vector<4x8x32xf32> to vector<1x8x32xf32>
    %37 = vector.shape_cast %36 : vector<1x8x32xf32> to vector<8x32xf32>
    %38 = vector.shape_cast %37 : vector<8x32xf32> to vector<1x8x32xf32>
    %39 = vector.extract_strided_slice %2 {offsets = [3, 0, 0], sizes = [1, 16, 32], strides = [1, 1, 1]} : vector<4x16x32xf32> to vector<1x16x32xf32>
    %40 = vector.shape_cast %39 : vector<1x16x32xf32> to vector<16x32xf32>
    %41 = vector.shape_cast %40 : vector<16x32xf32> to vector<16x1x32xf32>
    %42 = vector.broadcast %38 : vector<1x8x32xf32> to vector<16x8x32xf32>
    %43 = vector.broadcast %41 : vector<16x1x32xf32> to vector<16x8x32xf32>
    %44 = arith.mulf %42, %43 : vector<16x8x32xf32>
    %45 = arith.addf %35, %44 : vector<16x8x32xf32>
    %46 = vector.extract_strided_slice %45 {offsets = [0, 0, 0], sizes = [8, 8, 32], strides = [1, 1, 1]} : vector<16x8x32xf32> to vector<8x8x32xf32>
    %c0_9 = arith.constant 0 : index
    %c0_10 = arith.constant 0 : index
    %c0_11 = arith.constant 0 : index
    %c0_12 = arith.constant 0 : index
    %47 = vector.load %arg5[%c0_9, %c0_10, %c0_11, %c0_12] : memref<1x8x8x64xf32, #tpu.memory_space<vmem>>, vector<1x8x8x32xf32>
    %48 = vector.shape_cast %47 : vector<1x8x8x32xf32> to vector<8x8x32xf32>
    %49 = vector.shape_cast %46 : vector<8x8x32xf32> to vector<1x8x8x32xf32>
    tpu.vector_store %arg5[%c0_9, %c0_10, %c0_11, %c0_12], %49 {strides = array<i32>} : memref<1x8x8x64xf32, #tpu.memory_space<vmem>>, vector<1x8x8x32xf32>,
    %50 = vector.extract_strided_slice %45 {offsets = [8, 0, 0], sizes = [8, 8, 32], strides = [1, 1, 1]} : vector<16x8x32xf32> to vector<8x8x32xf32>
    %c0_13 = arith.constant 0 : index
    %c0_14 = arith.constant 0 : index
    %c0_15 = arith.constant 0 : index
    %c32 = arith.constant 32 : index
    %51 = vector.load %arg5[%c0_13, %c0_14, %c0_15, %c32] : memref<1x8x8x64xf32, #tpu.memory_space<vmem>>, vector<1x8x8x32xf32>
    %52 = vector.shape_cast %51 : vector<1x8x8x32xf32> to vector<8x8x32xf32>
    %53 = vector.shape_cast %50 : vector<8x8x32xf32> to vector<1x8x8x32xf32>
    tpu.vector_store %arg5[%c0_13, %c0_14, %c0_15, %c32], %53 {strides = array<i32>} : memref<1x8x8x64xf32, #tpu.memory_space<vmem>>, vector<1x8x8x32xf32>,
    return
  }
  func.func @transform_0(%arg0: i32, %arg1: i32) -> (i32, i32, i32, i32) {
    %c0_i32 = arith.constant 0 : i32
    %c0_i32_0 = arith.constant 0 : i32
    %c0_i32_1 = arith.constant 0 : i32
    return %arg0, %c0_i32, %arg1, %c0_i32_0 : i32, i32, i32, i32
  }
  func.func @transform_1(%arg0: i32, %arg1: i32) -> (i32, i32, i32) {
    %c0_i32 = arith.constant 0 : i32
    %c0_i32_0 = arith.constant 0 : i32
    %c0_i32_1 = arith.constant 0 : i32
    %c0_i32_2 = arith.constant 0 : i32
    return %c0_i32, %c0_i32_0, %c0_i32_1 : i32, i32, i32
  }
  func.func @transform_2(%arg0: i32, %arg1: i32) -> (i32, i32, i32) {
    %c0_i32 = arith.constant 0 : i32
    %c0_i32_0 = arith.constant 0 : i32
    %c0_i32_1 = arith.constant 0 : i32
    %c0_i32_2 = arith.constant 0 : i32
    return %c0_i32, %c0_i32_0, %c0_i32_1 : i32, i32, i32
  }
  func.func @transform_3(%arg0: i32, %arg1: i32) -> (i32, i32, i32, i32) {
    %c0_i32 = arith.constant 0 : i32
    %c0_i32_0 = arith.constant 0 : i32
    %c0_i32_1 = arith.constant 0 : i32
    return %arg0, %c0_i32, %arg1, %c0_i32_0 : i32, i32, i32, i32
  }
}

</mosaic_0001>

<bundles_post_ra>
// kernel: tile.0
= control target key start
LH: loop header
LB: loop body
LE: loop exit
PB: predicated region body
PF: predicated region fallthrough
CT: control target
= control target key end

     0   :  { %vm8_vm0 = vcmask 7168   ;;  %s217_s8 = smov 125   ;;  %s218_s9 = smov 126   ;;  %s300_s0 = inlined_call_operand.vmem [shape: f32[2,8], index: 0, kind: input, shape index: {}]   ;;  %s301_s1 = inlined_call_operand.vmem [shape: f32[16,1,1], index: 1, kind: output, shape index: {}]  }
   0x1   :  { %v5_v0 = vld [vmem:[%s300_s0] sm:$0x3]  ;;  %s216_s0 = smov 127   ;;  %s219_s10 = smov 124  }
   0x2   :  { %6 = vst [vmem:[#allocation1] sm:$0x3] %v5_v0  ;;  %s220_s15 = smov 123   ;;  %s221_s16 = smov 122  }
   0x3   :  { %s222_s17 = smov 121  }
   0x9   :  { %v12_v1 = vld [vmem:[#allocation1] sm:$0x3]  }
   0xa   :  { %v28_v2 = vld [vmem:[#allocation1] sm:$0x3]   ;;  %13 = vrot.lane.b32.xlu0 %v12_v1, %s216_s0 }
   0xb   :  { %v7_v3 = vld [vmem:[#allocation1] sm:$0x3]   ;;  %29 = vrot.lane.b32.xlu1 %v28_v2, %s217_s8 }
   0xc   :  { %9 = vst.msk [vmem:[#allocation0] sm:$0x1] %vm8_vm0, %v7_v3   ;;  %11 = vst.msk [vmem:[#allocation0 + $0x3f] sm:$0x2] %vm8_vm0, %v7_v3   ;;  %v20_v4 = vld [vmem:[#allocation1] sm:$0x3]  }
   0xd   :  { %v36_v5 = vld [vmem:[#allocation1] sm:$0x3]  }
   0xe   :  { %21 = vrot.lane.b32.xlu0 %v20_v4, %s218_s9  ;;  %v44_v6 = vld [vmem:[#allocation1] sm:$0x3]  }
   0xf   :  { %37 = vrot.lane.b32.xlu1 %v36_v5, %s219_s10  ;;  %v52_v7 = vld [vmem:[#allocation1] sm:$0x3]  }
  0x10   :  { %v60_v10 = vld [vmem:[#allocation1] sm:$0x3]  }
  0x12   :  { %45 = vrot.lane.b32.xlu0 %v44_v6, %s220_s15 }
  0x13   :  { %v72_v8 = vld [vmem:[#allocation0] sm:$0x1]  ;;  %53 = vrot.lane.b32.xlu1 %v52_v7, %s221_s16 }
  0x14   :  { %v125_v9 = vld [vmem:[#allocation0 + $0x40] sm:$0x1]  ;;  %75 = vst [vmem:[%s301_s1] sm:$0x1] %v72_v8 }
  0x15   :  { %201 = vst [vmem:[%s301_s1 + $0x8] sm:$0x1] %v125_v9 }
  0x16   :  { %61 = vrot.lane.b32.xlu0 %v60_v10, %s222_s17 }
  0x7c   :  { %v14_v11 = vpop.permute.xlu0 %13  }
  0x7d   :  { %v30_v12 = vpop.permute.xlu1 %29   ;;  %17 = vst.msk [vmem:[#allocation0 + $0x8] sm:$0x1] %vm8_vm0, %v14_v11   ;;  %19 = vst.msk [vmem:[#allocation0 + $0x47] sm:$0x2] %vm8_vm0, %v14_v11  }
  0x7e   :  { %33 = vst.msk [vmem:[#allocation0 + $0x18] sm:$0x1] %vm8_vm0, %v30_v12   ;;  %35 = vst.msk [vmem:[#allocation0 + $0x57] sm:$0x2] %vm8_vm0, %v30_v12  }
  0x80   :  { %v22_v13 = vpop.permute.xlu0 %21  }
  0x81   :  { %v38_v14 = vpop.permute.xlu1 %37   ;;  %25 = vst.msk [vmem:[#allocation0 + $0x10] sm:$0x1] %vm8_vm0, %v22_v13   ;;  %27 = vst.msk [vmem:[#allocation0 + $0x4f] sm:$0x2] %vm8_vm0, %v22_v13  }
  0x82   :  { %41 = vst.msk [vmem:[#allocation0 + $0x20] sm:$0x1] %vm8_vm0, %v38_v14   ;;  %43 = vst.msk [vmem:[#allocation0 + $0x5f] sm:$0x2] %vm8_vm0, %v38_v14  }
  0x84   :  { %v77_v15 = vld [vmem:[#allocation0 + $0x8] sm:$0x1]  ;;  %v46_v18 = vpop.permute.xlu0 %45  }
  0x85   :  { %v132_v16 = vld [vmem:[#allocation0 + $0x48] sm:$0x1]  ;;  %v90_v17 = vld [vmem:[#allocation0 + $0x18] sm:$0x1]  ;;  %v54_v19 = vpop.permute.xlu1 %53   ;;  %194 = vst [vmem:[%s301_s1 + $0x1] sm:$0x1] %v77_v15 }
  0x86   :  { %202 = vst [vmem:[%s301_s1 + $0x9] sm:$0x1] %v132_v16  ;;  %196 = vst [vmem:[%s301_s1 + $0x3] sm:$0x1] %v90_v17  ;;  %v146_v20 = vld [vmem:[#allocation0 + $0x58] sm:$0x1] }
  0x87   :  { %49 = vst.msk [vmem:[#allocation0 + $0x28] sm:$0x1] %vm8_vm0, %v46_v18   ;;  %51 = vst.msk [vmem:[#allocation0 + $0x67] sm:$0x2] %vm8_vm0, %v46_v18  }
  0x88   :  { %57 = vst.msk [vmem:[#allocation0 + $0x30] sm:$0x1] %vm8_vm0, %v54_v19   ;;  %59 = vst.msk [vmem:[#allocation0 + $0x6f] sm:$0x2] %vm8_vm0, %v54_v19   ;;  %v83_v21 = vld [vmem:[#allocation0 + $0x10] sm:$0x1]  ;;  %v62_v24 = vpop.permute.xlu0 %61  }
  0x89   :  { %204 = vst [vmem:[%s301_s1 + $0xb] sm:$0x1] %v146_v20  ;;  %v139_v22 = vld [vmem:[#allocation0 + $0x50] sm:$0x1]  ;;  %v97_v23 = vld [vmem:[#allocation0 + $0x20] sm:$0x1] }
  0x8a   :  { %195 = vst [vmem:[%s301_s1 + $0x2] sm:$0x1] %v83_v21  ;;  %203 = vst [vmem:[%s301_s1 + $0xa] sm:$0x1] %v139_v22  ;;  %v153_v25 = vld [vmem:[#allocation0 + $0x60] sm:$0x1] }
  0x8b   :  { %197 = vst [vmem:[%s301_s1 + $0x4] sm:$0x1] %v97_v23  ;;  %65 = vst.msk [vmem:[#allocation0 + $0x38] sm:$0x1] %vm8_vm0, %v62_v24  }
  0x8c   :  { %67 = vst.msk [vmem:[#allocation0 + $0x77] sm:$0x2] %vm8_vm0, %v62_v24   ;;  %205 = vst [vmem:[%s301_s1 + $0xc] sm:$0x1] %v153_v25 }
  0x8e   :  { %v104_v26 = vld [vmem:[#allocation0 + $0x28] sm:$0x1] }
  0x8f   :  { %v160_v27 = vld [vmem:[#allocation0 + $0x68] sm:$0x1]  ;;  %v111_v28 = vld [vmem:[#allocation0 + $0x30] sm:$0x1]  ;;  %198 = vst [vmem:[%s301_s1 + $0x5] sm:$0x1] %v104_v26 }
  0x90   :  { %206 = vst [vmem:[%s301_s1 + $0xd] sm:$0x1] %v160_v27  ;;  %199 = vst [vmem:[%s301_s1 + $0x6] sm:$0x1] %v111_v28  ;;  %v167_v29 = vld [vmem:[#allocation0 + $0x70] sm:$0x1] }
  0x91   :  { %207 = vst [vmem:[%s301_s1 + $0xe] sm:$0x1] %v167_v29 }
  0x92   :  { %v118_v30 = vld [vmem:[#allocation0 + $0x38] sm:$0x1] }
  0x93   :  { %v174_v31 = vld [vmem:[#allocation0 + $0x78] sm:$0x1]  ;;  %200 = vst [vmem:[%s301_s1 + $0x7] sm:$0x1] %v118_v30 }
  0x94   :  { %208 = vst [vmem:[%s301_s1 + $0xf] sm:$0x1] %v174_v31 }

// kernel: tile.16
= control target key start
LH: loop header
LB: loop body
LE: loop exit
PB: predicated region body
PF: predicated region fallthrough
CT: control target
= control target key end

     0   :  { %s22_s0 = inlined_call_operand.vmem [shape: f32[8], index: 0, kind: input, shape index: {}]   ;;  %s23_s1 = inlined_call_operand.vmem [shape: f32[2,8], index: 1, kind: output, shape index: {}]  }
   0x1   :  { %v4_v0 = vld [vmem:[%s22_s0] ss:$0 sm:$0xff] }
   0x2   :  { %5 = vst [vmem:[%s23_s1] sm:$0x3] %v4_v0 }

// kernel: deconv_block.1
= control target key start
LH: loop header
LB: loop body
LE: loop exit
PB: predicated region body
PF: predicated region fallthrough
CT: control target
= control target key end

     0   :  { %s1623_s12 = smov 0   ;;  %s1625_s13 = smov 0   ;;  %s2293_s0 = inlined_call_operand.vmem [shape: f32[2,4,16,32], index: 0, kind: input, shape index: {}]   ;;  %s2294_s1 = inlined_call_operand.vmem [shape: f32[4,16,32], index: 1, kind: input, shape index: {}]   ;;  %s2295_s2 = inlined_call_operand.vmem [shape: f32[16,1,1], index: 2, kind: input, shape index: {}]   ;;  %s2296_s3 = inlined_call_operand.vmem [shape: f32[2,8,16,64], index: 3, kind: output, shape index: {}]  }
   0x1   :  { %s1627_s14 = smov 0   ;;  %s1629_s15 = smov 0  }
   0x2   :  { %s1631_s16 = smov 0   ;;  %s1633_s17 = smov 0  }
   0x3   :  { %s1635_s18 = smov 0  }
   0x4 LB: > { %s22_s19 = sadd.s32 1, %s1590_s16  ;;  %s25_s20 = sadd.s32 1, %s1594_s17  ;;  %s1598_s18 = sphi %s1635_s18, %s13_s18   ;;  %s1594_s17 = sphi %s1633_s17, %s2318_s17   ;;  %s1590_s16 = sphi %s1631_s16, %s2317_s16   ;;  %s1586_s15 = sphi %s1629_s15, %s2316_s15   ;;  %s1582_s14 = sphi %s1627_s14, %s2315_s14   ;;  %s1578_s13 = sphi %s1625_s13, %s2314_s13   ;;  %s1574_s12 = sphi %s1623_s12, %s2313_s12  }
   0x5   : > { %p23_p0 = scmp.ge.s32.totalorder %s22_s19, 2  ;;  %s1444_s21 = sadd.s32 4294967295, %s1598_s18  }
   0x6   : > { %p41_p1 = scmp.ne.s32.totalorder %s1578_s13, %s1574_s12  ;;  %p42_p2 = scmp.eq.s32.totalorder %s1598_s18, 0 }
   0x7   : > { %s2320_s19 = smov (%p23_p0, %s22_s19), 0  ;;  %s2322_s20 = smov (!%p23_p0, %s25_s20), %s1594_s17 }
   0x8   : > { %p27_p3 = scmp.ge.s32.totalorder %s2322_s20, 2  ;;  %p115_p4 = scmp.eq.s32.totalorder %s1444_s21, 3 }
   0x9   : > { %s30_s22 = ssub.s32 %s1590_s16, %s2320_s19  ;;  %p43_p5 = por %p42_p2, %p41_p1 }
   0xa   : > { %s2324_s20 = smov (%p27_p3, %s2322_s20), 0  ;;  %p1671_p6 = por %p115_p4, %p41_p1 }
   0xb   : > { %s29_s24 = ssub.s32 %s1594_s17, %s2324_s20  ;;  %s34_s26 = sadd.s32 1, %s1578_s13 }
   0xc   : > { %s31_s25 = sor.u32 %s30_s22, %s29_s24  ;;  %p1447_p8 = scmp.ge.s32.totalorder %s1598_s18, 4 }
   0xd   : > { %p32_p7 = scmp.eq.s32.totalorder %s31_s25, 0 }
   0xe   : > { %143 = sbr.rel (%p1447_p8) target bundleno = 27 (0x1b), region = 24 }
   0xf   : > { %s1679_s27 = scalar_select %p32_p7, %s1578_s13, %s34_s26  }
  0x13   : > { %146 = sbr.rel (!%p43_p5) target bundleno = 27 (0x1b), region = 28  ;;  %s148_s28 = sand.u32 (%p43_p5), 1, %s1578_s13  }
  0x14   : > { %s1449_s29 = sshll.u32 (%p43_p5), %s1594_s17, 3  ;;  %s1448_s30 = sshll.u32 (%p43_p5), %s148_s28, 5 }
  0x15   : > { %s152_s4 = sadd.s32 (%p43_p5), %s1590_s16, %s1449_s29  ;;  %s150_s9 = scalar_lea.vmem (%p43_p5), [#allocation2], %s1448_s30 }
  0x16   : > { %s1450_s5 = sshll.u32 (%p43_p5), %s152_s4, 3 }
  0x17   : > { %s154_s8 = scalar_lea.vmem (%p43_p5), %s2293_s0, %s1450_s5 }
  0x18   : > { %v189_v0 = vld [vmem:[%s154_s8] sm:$0xff]  ;;  %v191_v1 = vld [vmem:[%s154_s8 + $0x10] sm:$0xff] }
  0x19   : > { %v193_v2 = vld [vmem:[%s154_s8 + $0x20] sm:$0xff]  ;;  %190 = vst [vmem:[%s150_s9] sm:$0xff] %v189_v0  ;;  %192 = vst [vmem:[%s150_s9 + $0x8] sm:$0xff] %v191_v1  ;;  %v195_v3 = vld [vmem:[%s154_s8 + $0x30] sm:$0xff] }
  0x1a   : > { %194 = vst [vmem:[%s150_s9 + $0x10] sm:$0xff] %v193_v2  ;;  %196 = vst [vmem:[%s150_s9 + $0x18] sm:$0xff] %v195_v3 }
  0x1b PF: > { %p1451_p9 = scmp.ge.s32.totalorder %s1598_s18, 1  ;;  %p201_p10 = scmp.lt.s32.totalorder %s1598_s18, 5 }
  0x1d   : > { %p202_p11 = pnand %p1451_p9, %p201_p10 }
  0x1f   : > { %205 = sbr.rel (%p202_p11) target bundleno = 310 (0x136), region = 66 }
  0x24   : > { %v1464_v4 = vld [vmem:[%s2295_s2 + $0xa] ss:$0 sm:$0xff]  ;;  %v1462_v5 = vld [vmem:[%s2295_s2 + $0x8] ss:$0 sm:$0xff]  ;;  %v1600_v6 = vmov 0   ;;  %v408_v23 = vlaneseq  ;;  %v237_v28 = vld [vmem:[%s2294_s1 + $0x18] sm:$0xff] }
  0x25   : > { %1535 = vset.pattern.permute.xlu1 %v1600_v6  ;;  %1534 = vset.pattern.permute.xlu0 %v1600_v6  ;;  %v1465_v7 = vld [vmem:[%s2295_s2 + $0xb] ss:$0 sm:$0xff]  ;;  %v1463_v8 = vld [vmem:[%s2295_s2 + $0x9] ss:$0 sm:$0xff]  ;;  %v1467_v9 = vld [vmem:[%s2295_s2 + $0xd] ss:$0 sm:$0xff]  ;;  %v665_v34 = vcombine.high %v237_v28, %v237_v28 }
  0x26   : > { %379 = vperm.xlu1 %1535, %v1464_v4   ;;  %371 = vperm.xlu0 %1534, %v1462_v5   ;;  %v1466_v10 = vld [vmem:[%s2295_s2 + $0xc] ss:$0 sm:$0xff]  ;;  %v1469_v11 = vld [vmem:[%s2295_s2 + $0xf] ss:$0 sm:$0xff]  ;;  %v1468_v12 = vld [vmem:[%s2295_s2 + $0xe] ss:$0 sm:$0xff] }
  0x27   : > { %v1455_v13 = vld [vmem:[%s2295_s2 + $0x1] ss:$0 sm:$0xff]  ;;  %v1454_v14 = vld [vmem:[%s2295_s2] ss:$0 sm:$0xff]  ;;  %v1457_v15 = vld [vmem:[%s2295_s2 + $0x3] ss:$0 sm:$0xff] }
  0x28   : > { %v1456_v16 = vld [vmem:[%s2295_s2 + $0x2] ss:$0 sm:$0xff]  ;;  %v1459_v17 = vld [vmem:[%s2295_s2 + $0x5] ss:$0 sm:$0xff]  ;;  %v1458_v18 = vld [vmem:[%s2295_s2 + $0x4] ss:$0 sm:$0xff] }
  0x29   : > { %v1461_v19 = vld [vmem:[%s2295_s2 + $0x7] ss:$0 sm:$0xff]  ;;  %v1460_v20 = vld [vmem:[%s2295_s2 + $0x6] ss:$0 sm:$0xff]  ;;  %v1601_v21 = vmov 1966171168  }
  0x2a   : > { %383 = vperm.xlu1 %1535, %v1465_v7   ;;  %375 = vperm.xlu0 %1534, %v1463_v8   ;;  %v406_v22 = vunpack.c.l.s4 %v1601_v21  ;;  %v409_v25 = vshrl.u32 %v408_v23, 7  ;;  %v235_v27 = vld [vmem:[%s2294_s1 + $0x8] sm:$0xff]  ;;  %s208_s26 = sand.u32 1, %s1574_s12   ;;  %v1768_v51 = vld [vmem:[%s2294_s1 + $0x38] sm:$0xff]  ;;  %v1775_v56 = vld [vmem:[%s2294_s1] sm:$0xff]  ;;  %s1602_s22 = smov 32  }
  0x2b   : > { %v239_v29 = vld [vmem:[%s2294_s1 + $0x28] sm:$0xff]  ;;  %v453_v33 = vcombine.high %v235_v27, %v235_v27  ;;  %s1452_s28 = sshll.u32 %s208_s26, 5  ;;  %v1089_v60 = vcombine.high %v1768_v51, %v1768_v51  ;;  %vm1250_vm0 = vcmask 261120   ;;  %s2174_s24 = sshll.u32 %s208_s26, 6  ;;  %vm1291_vm1 = vcmask 523520  }
  0x2c   : > { %v407_v24 = vunpack.c.0.s8 %v406_v22  ;;  %v1753_v37 = vsub.s32 0, %v409_v25  ;;  %v877_v38 = vcombine.high %v239_v29, %v239_v29  ;;  %s1777_s6 = scalar_lea.vmem [#allocation2], %s1452_s28  ;;  %s2207_s12 = scalar_lea.vmem [#allocation3], %s2174_s24 }
  0x2d   : > { %v1780_v57 = vld [vmem:[%s1777_s6] sm:$0xff]  ;;  %v1788_v62 = vld [vmem:[%s1777_s6 + $0x8] sm:$0xff]  ;;  %v1797_v3 = vld [vmem:[%s1777_s6 + $0x10] sm:$0xff]  ;;  %s1471_s25 = sshll.u32 (%p1671_p6), %s1586_s15, 4 }
  0x2e   : > { %391 = vperm.xlu1 %1535, %v1467_v9   ;;  %387 = vperm.xlu0 %1534, %v1466_v10   ;;  %v1738_v26 = vsub.s32 %v407_v24, %v409_v25  ;;  %s1308_s26 = sadd.s32 (%p1671_p6), %s1582_s14, %s1471_s25 }
  0x2f   : > { %s1472_s23 = sshll.u32 (%p1671_p6), %s1308_s26, 3 }
  0x30   : > { %v460_v30 = vrot.slane %v235_v27, %v1738_v26  ;;  %v672_v31 = vrot.slane %v237_v28, %v1738_v26  ;;  %v884_v32 = vrot.slane %v239_v29, %v1738_v26  ;;  %v467_v41 = vrot.slane %v453_v33, %v1738_v26  ;;  %v1839_v29 = vld [vmem:[%s2294_s1 + $0x10] sm:$0xff]  ;;  %s1310_s30 = scalar_lea.vmem (%p1671_p6), %s2296_s3, %s1472_s23 }
  0x31   : > { %v679_v42 = vrot.slane %v665_v34, %v1738_v26  ;;  %v891_v50 = vrot.slane %v877_v38, %v1738_v26  ;;  %v1794_v2 = vrot.slane %v1768_v51, %v1738_v26  ;;  %v1803_v7 = vrot.slane %v1775_v56, %v1738_v26 }
  0x32   : > { %399 = vperm.xlu1 %1535, %v1469_v11   ;;  %395 = vperm.xlu0 %1534, %v1468_v12   ;;  %v468_v35 = vcombine.high %v460_v30, %v460_v30  ;;  %v680_v36 = vcombine.high %v672_v31, %v672_v31  ;;  %v476_v39 = vrot.slane %v460_v30, %v1738_v26 }
  0x33   : > { %v892_v40 = vcombine.high %v884_v32, %v884_v32  ;;  %v688_v43 = vrot.slane %v672_v31, %v1738_v26  ;;  %v900_v44 = vrot.slane %v884_v32, %v1738_v26  ;;  %v469_v54 = vcombine.high %v467_v41, %v467_v41 }
  0x34   : > { %v490_v45 = vrot.slane %v468_v35, %v1738_v26  ;;  %v498_v46 = vcombine.high %v476_v39, %v476_v39  ;;  %v702_v47 = vrot.slane %v680_v36, %v1738_v26  ;;  %v537_v52 = vrot.slane %v476_v39, %v1753_v37  ;;  %v1860_v39 = vld [vmem:[%s2294_s1 + $0x20] sm:$0xff] }
  0x35   : > { %v710_v48 = vcombine.high %v688_v43, %v688_v43  ;;  %v922_v49 = vcombine.high %v900_v44, %v900_v44  ;;  %v914_v53 = vrot.slane %v892_v40, %v1738_v26  ;;  %v681_v55 = vcombine.high %v679_v42, %v679_v42  ;;  %v1865_v40 = vld [vmem:[%s2294_s1 + $0x30] sm:$0xff] }
  0x36   : > { %343 = vperm.xlu1 %1535, %v1455_v13   ;;  %339 = vperm.xlu0 %1534, %v1454_v14   ;;  %v749_v58 = vrot.slane %v688_v43, %v1753_v37  ;;  %v500_v59 = vcombine.high %v490_v45, %v490_v45  ;;  %v545_v63 = vrot.slane %v498_v46, %v1753_v37 }
  0x37   : > { %v961_v0 = vrot.slane %v900_v44, %v1753_v37  ;;  %v712_v1 = vcombine.high %v702_v47, %v702_v47  ;;  %v757_v4 = vrot.slane %v710_v48, %v1753_v37  ;;  %v969_v5 = vrot.slane %v922_v49, %v1753_v37 }
  0x38   : > { %v893_v6 = vcombine.high %v891_v50, %v891_v50  ;;  %v1806_v8 = vmul.f32 %v537_v52, %v1780_v57  ;;  %v924_v9 = vcombine.high %v914_v53, %v914_v53  ;;  %v497_v10 = vrot.slane %v469_v54, %v1738_v26 }
  0x39   : > { %v709_v11 = vrot.slane %v681_v55, %v1738_v26  ;;  %v1811_v12 = vmul.f32 %v749_v58, %v1788_v62  ;;  %v549_v13 = vrot.slane %v500_v59, %v1753_v37  ;;  %v541_v14 = vrot.slane %v490_v45, %v1753_v37 }
  0x3a   : > { %351 = vperm.xlu1 %1535, %v1457_v15   ;;  %347 = vperm.xlu0 %1534, %v1456_v16   ;;  %v483_v15 = vrot.slane %v467_v41, %v1738_v26  ;;  %v1817_v16 = vmul.f32 %v545_v63, %v1780_v57  ;;  %v965_v21 = vrot.slane %v914_v53, %v1753_v37 }
  0x3b   : > { %v921_v22 = vrot.slane %v893_v6, %v1738_v26  ;;  %v695_v23 = vrot.slane %v679_v42, %v1738_v26  ;;  %v1831_v24 = vmul.f32 %v969_v5, %v1797_v3  ;;  %v973_v25 = vrot.slane %v924_v9, %v1753_v37 }
  0x3c   : > { %v557_v27 = vrot.slane %v497_v10, %v1753_v37  ;;  %v769_v28 = vrot.slane %v709_v11, %v1753_v37  ;;  %v1842_v30 = vmul.f32 %v549_v13, %v1780_v57  ;;  %v1845_v31 = vmul.f32 %v541_v14, %v1780_v57 }
  0x3d   : > { %v553_v32 = vrot.slane %v483_v15, %v1753_v37  ;;  %v907_v33 = vrot.slane %v891_v50, %v1738_v26  ;;  %v1112_v36 = vrot.slane %v1794_v2, %v1738_v26  ;;  %v501_v38 = vcombine.high %v497_v10, %v497_v10 }
  0x3e   : > { %359 = vperm.xlu1 %1535, %v1459_v17   ;;  %355 = vperm.xlu0 %1534, %v1458_v18   ;;  %v1820_v17 = vmul.f32 %v961_v0, %v1797_v3  ;;  %v761_v18 = vrot.slane %v712_v1, %v1753_v37  ;;  %v1868_v41 = vmul.f32 %v965_v21, %v1797_v3  ;;  %v1900_v1 = vld [vmem:[%s1777_s6 + $0x18] sm:$0xff] }
  0x3f   : > { %v981_v42 = vrot.slane %v921_v22, %v1753_v37  ;;  %v765_v43 = vrot.slane %v695_v23, %v1753_v37  ;;  %v623_v44 = vrot.slane %v1839_v29, %v1738_v26  ;;  %v1875_v45 = vmul.f32 %v973_v25, %v1797_v3 }
  0x40   : > { %v1850_v34 = vmul.f32 %v761_v18, %v1788_v62  ;;  %v1878_v46 = vmul.f32 %v557_v27, %v1780_v57  ;;  %v713_v48 = vcombine.high %v709_v11, %v709_v11  ;;  %v1884_v49 = vmul.f32 %v553_v32, %v1780_v57 }
  0x41   : > { %v977_v50 = vrot.slane %v907_v33, %v1753_v37  ;;  %v835_v52 = vrot.slane %v1860_v39, %v1738_v26  ;;  %v1047_v53 = vrot.slane %v1865_v40, %v1738_v26  ;;  %v1173_v54 = vrot.slane %v1112_v36, %v1753_v37 }
  0x42   : > { %367 = vperm.xlu1 %1535, %v1461_v19   ;;  %363 = vperm.xlu0 %1534, %v1460_v20   ;;  %v753_v19 = vrot.slane %v702_v47, %v1753_v37  ;;  %v1825_v20 = vmul.f32 %v757_v4, %v1788_v62  ;;  %v1881_v47 = vmul.f32 %v769_v28, %v1788_v62 }
  0x43   : > { %v565_v55 = vrot.slane %v501_v38, %v1753_v37  ;;  %v925_v58 = vcombine.high %v921_v22, %v921_v22  ;;  %v499_v59 = vcombine.high %v483_v15, %v483_v15  ;;  %v1894_v63 = vmul.f32 %v981_v42, %v1797_v3 }
  0x44   : > { %v1853_v35 = vmul.f32 %v753_v19, %v1788_v62  ;;  %v1897_v0 = vmul.f32 %v765_v43, %v1788_v62  ;;  %v419_v4 = vcombine.high %v1803_v7, %v1803_v7  ;;  %v631_v5 = vcombine.high %v623_v44, %v623_v44 }
  0x45   : > { %v777_v6 = vrot.slane %v713_v48, %v1753_v37  ;;  %v711_v9 = vcombine.high %v695_v23, %v695_v23  ;;  %v923_v10 = vcombine.high %v907_v33, %v907_v33  ;;  %v1104_v11 = vcombine.high %v1794_v2, %v1794_v2 }
  0x46   : > { %v1908_v13 = vmul.f32 %v977_v50, %v1797_v3  ;;  %v1134_v14 = vcombine.high %v1112_v36, %v1112_v36  ;;  %v843_v15 = vcombine.high %v835_v52, %v835_v52  ;;  %v1055_v18 = vcombine.high %v1047_v53, %v1047_v53 }
  0x47   : > { %v1911_v19 = vmul.f32 %v1173_v54, %v1900_v1  ;;  %v1914_v21 = vmul.f32 %v565_v55, %v1780_v57  ;;  %v989_v22 = vrot.slane %v925_v58, %v1753_v37  ;;  %v561_v23 = vrot.slane %v499_v59, %v1753_v37 }
  0x48   : > { %v441_v25 = vrot.slane %v419_v4, %v1738_v26  ;;  %v653_v2 = vrot.slane %v631_v5, %v1738_v26  ;;  %v427_v27 = vrot.slane %v1803_v7, %v1738_v26  ;;  %v639_v28 = vrot.slane %v623_v44, %v1738_v26 }
  0x49   : > { %v773_v32 = vrot.slane %v711_v9, %v1753_v37  ;;  %v985_v33 = vrot.slane %v923_v10, %v1753_v37  ;;  %v1126_v36 = vrot.slane %v1104_v11, %v1738_v26  ;;  %v851_v38 = vrot.slane %v835_v52, %v1738_v26 }
  0x4a   : > { %v1181_v42 = vrot.slane %v1134_v14, %v1753_v37  ;;  %v865_v43 = vrot.slane %v843_v15, %v1738_v26  ;;  %v1077_v48 = vrot.slane %v1055_v18, %v1738_v26  ;;  %v1063_v50 = vrot.slane %v1047_v53, %v1738_v26 }
  0x4b   : > { %v1932_v7 = vmul.f32 %v777_v6, %v1788_v62  ;;  %v1935_v44 = vmul.f32 %v989_v22, %v1797_v3  ;;  %v1938_v54 = vmul.f32 %v561_v23, %v1780_v57  ;;  %v1177_v55 = vrot.slane %v1126_v36, %v1753_v37 }
  0x4c   : > { %v509_v52 = vrot.slane %v441_v25, %v1753_v37  ;;  %v721_v58 = vrot.slane %v653_v2, %v1753_v37  ;;  %v505_v59 = vrot.slane %v427_v27, %v1753_v37  ;;  %v717_v4 = vrot.slane %v639_v28, %v1753_v37 }
  0x4d   : > { %v1946_v53 = vmul.f32 %v773_v32, %v1788_v62  ;;  %v1949_v5 = vmul.f32 %v985_v33, %v1797_v3  ;;  %v929_v6 = vrot.slane %v851_v38, %v1753_v37  ;;  %v1136_v9 = vcombine.high %v1126_v36, %v1126_v36 }
  0x4e   : > { %v1953_v10 = vmul.f32 %v1181_v42, %v1900_v1  ;;  %v933_v11 = vrot.slane %v865_v43, %v1753_v37  ;;  %v1145_v14 = vrot.slane %v1077_v48, %v1753_v37  ;;  %v1141_v15 = vrot.slane %v1063_v50, %v1753_v37 }
  0x4f   : > { %v1959_v18 = vmul.f32 %v1177_v55, %v1900_v1  ;;  %v1103_v22 = vrot.slane %v1089_v60, %v1738_v26  ;;  %v451_v23 = vcombine.high %v441_v25, %v441_v25  ;;  %v663_v32 = vcombine.high %v653_v2, %v653_v2 }
  0x50   : > { %v1966_v33 = vmul.f32 %v509_v52, %v1780_v57  ;;  %v1969_v36 = vmul.f32 %v721_v58, %v1788_v62  ;;  %v1972_v42 = vmul.f32 %v505_v59, %v1780_v57  ;;  %v1975_v61 = vmul.f32 %v717_v4, %v1788_v62 }
  0x51   : > { %v1978_v55 = vmul.f32 %v929_v6, %v1797_v3  ;;  %v1185_v51 = vrot.slane %v1136_v9, %v1753_v37  ;;  %v1119_v60 = vrot.slane %v1103_v22, %v1738_v26  ;;  %v875_v25 = vcombine.high %v865_v43, %v865_v43 }
  0x52   : > { %2298 = vst [vmem:[#allocation4_spill] sm:$0xff] %v1969_v36  ;;  %2299 = vst [vmem:[#allocation5_spill] sm:$0xff] %v1975_v61  ;;  %v1983_v2 = vmul.f32 %v933_v11, %v1797_v3  ;;  %v1986_v52 = vmul.f32 %v1145_v14, %v1900_v1  ;;  %v1989_v58 = vmul.f32 %v1141_v15, %v1900_v1 }
  0x53   : > { %2300 = vst [vmem:[#allocation6_spill] sm:$0xff] %v1978_v55  ;;  %v1087_v59 = vcombine.high %v1077_v48, %v1077_v48  ;;  %v517_v4 = vrot.slane %v451_v23, %v1753_v37  ;;  %v729_v6 = vrot.slane %v663_v32, %v1753_v37  ;;  %v449_v55 = vcombine.high %v427_v27, %v427_v27 }
  0x54   : > { %v661_v61 = vcombine.high %v639_v28, %v639_v28  ;;  %v873_v9 = vcombine.high %v851_v38, %v851_v38  ;;  %v1105_v36 = vcombine.high %v1103_v22, %v1103_v22  ;;  %v2301_v43 = vcombine.high %v1775_v56, %v1775_v56 }
  0x55   : > { %v616_v14 = vcombine.high %v1839_v29, %v1839_v29  ;;  %v2000_v15 = vmul.f32 %v1185_v51, %v1900_v1  ;;  %v1189_v48 = vrot.slane %v1119_v60, %v1753_v37  ;;  %v941_v23 = vrot.slane %v875_v25, %v1753_v37 }
  0x56   : > { %v418_v11 = vrot.slane %v2301_v43, %v1738_v26  ;;  %v1085_v32 = vcombine.high %v1063_v50, %v1063_v50  ;;  %v1153_v27 = vrot.slane %v1087_v59, %v1753_v37  ;;  %v1135_v28 = vcombine.high %v1119_v60, %v1119_v60 }
  0x57   : > { %v828_v38 = vcombine.high %v1860_v39, %v1860_v39  ;;  %v1040_v56 = vcombine.high %v1865_v40, %v1865_v40  ;;  %v2010_v22 = vmul.f32 %v517_v4, %v1780_v57  ;;  %v2013_v29 = vmul.f32 %v729_v6, %v1788_v62 }
  0x58   : > { %v513_v51 = vrot.slane %v449_v55, %v1753_v37  ;;  %v725_v25 = vrot.slane %v661_v61, %v1753_v37  ;;  %v937_v50 = vrot.slane %v873_v9, %v1753_v37  ;;  %v2019_v60 = vrot.slane %v1105_v36, %v1738_v26 }
  0x59   : > { %2302 = vst [vmem:[#allocation7_spill] sm:$0xff] %v2013_v29  ;;  %v420_v59 = vcombine.high %v418_v11, %v418_v11  ;;  %v630_v39 = vrot.slane %v616_v14, %v1738_v26  ;;  %v2023_v40 = vmul.f32 %v1189_v48, %v1900_v1  ;;  %v2026_v4 = vmul.f32 %v941_v23, %v1797_v3 }
  0x5a   : > { %v1149_v6 = vrot.slane %v1085_v32, %v1753_v37  ;;  %v2030_v55 = vrot.slane %v418_v11, %v1738_v26  ;;  %v2033_v9 = vmul.f32 %v1153_v27, %v1900_v1  ;;  %v1197_v36 = vrot.slane %v1135_v28, %v1753_v37 }
  0x5b   : > { %2303 = vst [vmem:[#allocation8_spill] sm:$0xff] %v2026_v4  ;;  %v842_v14 = vrot.slane %v828_v38, %v1738_v26  ;;  %v1054_v48 = vrot.slane %v1040_v56, %v1738_v26  ;;  %v2041_v32 = vmul.f32 %v513_v51, %v1780_v57  ;;  %v2044_v11 = vmul.f32 %v725_v25, %v1788_v62 }
  0x5c   : > { %2304 = vst [vmem:[#allocation9_spill] sm:$0xff] %v2033_v9  ;;  %v2047_v4 = vmul.f32 %v937_v50, %v1797_v3  ;;  %v1193_v27 = vrot.slane %v2019_v60, %v1753_v37  ;;  %v2052_v28 = vrot.slane %v420_v59, %v1738_v26  ;;  %v632_v38 = vcombine.high %v630_v39, %v630_v39 }
  0x5d   : > { %v2057_v56 = vmul.f32 %v1149_v6, %v1900_v1  ;;  %v521_v51 = vrot.slane %v2030_v55, %v1753_v37  ;;  %v1056_v9 = vcombine.high %v1054_v48, %v1054_v48  ;;  %v2065_v59 = vrot.slane %v630_v39, %v1738_v26 }
  0x5e   : > { %v2071_v6 = vrot.slane %v842_v14, %v1738_v26  ;;  %v2080_v39 = vrot.slane %v632_v38, %v1738_v26 }
  0x5f   : > { %2305 = vst [vmem:[#allocation10_spill] sm:$0xff] %v2057_v56  ;;  %v2075_v56 = vmul.f32 %v1193_v27, %v1900_v1  ;;  %v733_v38 = vrot.slane %v2065_v59, %v1753_v37 }
  0xa1   : > { %v380_v61 = vpop.permute.xlu1 %379  ;;  %v372_v43 = vpop.permute.xlu0 %371 }
  0xa2   : > { %v608_v29 = vadd.f32 %v1817_v16, %v380_v61  ;;  %v606_v23 = vadd.f32 %v1806_v8, %v372_v43  ;;  %v2062_v61 = vmul.f32 %v1197_v36, %v1900_v1  ;;  %v844_v43 = vcombine.high %v842_v14, %v842_v14 }
  0xa3   : > { %v525_v36 = vrot.slane %v2052_v28, %v1753_v37  ;;  %v2086_v14 = vmul.f32 %v521_v51, %v1780_v57 }
  0xa4   : > { %v820_v16 = vadd.f32 %v1825_v20, %v608_v29  ;;  %v818_v8 = vadd.f32 %v1811_v12, %v606_v23  ;;  %v2089_v27 = vrot.slane %v844_v43, %v1738_v26 }
  0xa5   : > { %v384_v25 = vpop.permute.xlu1 %383  ;;  %v376_v50 = vpop.permute.xlu0 %375  ;;  %v2115_v43 = vmul.f32 %v525_v36, %v1780_v57 }
  0xa6   : > { %v1030_v20 = vadd.f32 %v1820_v17, %v818_v8  ;;  %v609_v12 = vadd.f32 %v1842_v30, %v384_v25  ;;  %v607_v29 = vadd.f32 %v1845_v31, %v376_v50  ;;  %v1032_v23 = vadd.f32 %v1831_v24, %v820_v16 }
  0xa7   : > { %v2092_v16 = vrot.slane %v1056_v9, %v1738_v26  ;;  %v945_v25 = vrot.slane %v2071_v6, %v1753_v37 }
  0xa8   : > { %v821_v17 = vadd.f32 %v1850_v34, %v609_v12  ;;  %v819_v30 = vadd.f32 %v1853_v35, %v607_v29  ;;  %v1242_v31 = vadd.f32 %v1911_v19, %v1030_v20  ;;  %v2097_v34 = vrot.slane %v1054_v48, %v1738_v26 }
  0xa9   : > { %v392_v8 = vpop.permute.xlu1 %391  ;;  %v388_v24 = vpop.permute.xlu0 %387  ;;  %v1244_v50 = vadd.f32 %v1953_v10, %v1032_v23  ;;  %v737_v26 = vrot.slane %v2080_v39, %v1753_v37  ;;  %v1161_v10 = vrot.slane %v2092_v16, %v1753_v37  ;;  %v2122_v29 = vmul.f32 %v733_v38, %v1788_v62 }
  0xaa   : > { %v1031_v35 = vadd.f32 %v1868_v41, %v819_v30  ;;  %v611_v19 = vadd.f32 %v1878_v46, %v392_v8  ;;  %v610_v51 = vadd.f32 %v1884_v49, %v388_v24  ;;  %1267 = vrot.lane.b32.xlu0 %v1242_v31, %s1602_s22  ;;  %v1033_v9 = vadd.f32 %v1875_v45, %v821_v17 }
  0xab   : > { %v1137_v41 = vcombine.high %v2019_v60, %v2019_v60  ;;  %v949_v45 = vrot.slane %v2089_v27, %v1753_v37  ;;  %v2131_v23 = vmul.f32 %v945_v25, %v1797_v3  ;;  %v2136_v17 = vmul.f32 %v737_v26, %v1788_v62 }
  0xac   : > { %v823_v46 = vadd.f32 %v1881_v47, %v611_v19  ;;  %v822_v49 = vadd.f32 %v1897_v0, %v610_v51  ;;  %v1243_v48 = vadd.f32 %v1959_v18, %v1031_v35  ;;  %v1157_v47 = vrot.slane %v2097_v34, %v1753_v37 }
  0xad   : > { %v400_v20 = vpop.permute.xlu1 %399  ;;  %v396_v12 = vpop.permute.xlu0 %395  ;;  %v1245_v36 = vadd.f32 %v2000_v15, %v1033_v9  ;;  %v1201_v30 = vrot.slane %v1137_v41, %v1753_v37  ;;  %v2146_v15 = vmul.f32 %v949_v45, %v1797_v3  ;;  %v2160_v19 = vmul.f32 %v1161_v10, %v1900_v1  ;;  %v2307_v9 = vld [vmem:[#allocation5_spill] sm:$0xff] }
  0xae   : > { %v1034_v0 = vadd.f32 %v1908_v13, %v822_v49  ;;  %v613_v18 = vadd.f32 %v1914_v21, %v400_v20  ;;  %v612_v60 = vadd.f32 %v1938_v54, %v396_v12  ;;  %1269 = vrot.lane.b32.xlu1 %v1243_v48, %s1602_s22  ;;  %1271 = vrot.lane.b32.xlu0 %v1244_v50, %s1602_s22 }
  0xaf   : > { %v452_v13 = vcombine.high %v2052_v28, %v2052_v28  ;;  %v1035_v21 = vadd.f32 %v1894_v63, %v823_v46  ;;  %v2149_v35 = vmul.f32 %v1157_v47, %v1900_v1  ;;  %v664_v28 = vcombine.high %v2080_v39, %v2080_v39 }
  0xb0   : > { %v825_v54 = vadd.f32 %v1932_v7, %v613_v18  ;;  %v824_v31 = vadd.f32 %v1946_v53, %v612_v60  ;;  %v1246_v8 = vadd.f32 %v2023_v40, %v1034_v0  ;;  %v450_v63 = vcombine.high %v2030_v55, %v2030_v55  ;;  %v2306_v55 = vld [vmem:[#allocation4_spill] sm:$0xff]  ;;  %v2309_v0 = vld [vmem:[#allocation7_spill] sm:$0xff] }
  0xb1   : > { %v344_v24 = vpop.permute.xlu1 %343  ;;  %v340_v38 = vpop.permute.xlu0 %339  ;;  %v1233_v39 = vmul.f32 %v1201_v30, %v1900_v1  ;;  %v533_v25 = vrot.slane %v452_v13, %v1753_v37  ;;  %v1247_v50 = vadd.f32 %v2075_v56, %v1035_v21  ;;  %v745_v46 = vrot.slane %v664_v28, %v1753_v37  ;;  %v2308_v56 = vld [vmem:[#allocation6_spill] sm:$0xff] }
  0xb2   : > { %v1036_v7 = vadd.f32 %v1949_v5, %v824_v31  ;;  %v599_v53 = vadd.f32 %v1966_v33, %v344_v24  ;;  %v598_v40 = vadd.f32 %v1972_v42, %v340_v38  ;;  %1273 = vrot.lane.b32.xlu1 %v1245_v36, %s1602_s22  ;;  %v1037_v51 = vadd.f32 %v1935_v44, %v825_v54  ;;  %v2312_v24 = vld [vmem:[#allocation10_spill] sm:$0xff] }
  0xb3   : > { %1275 = vrot.lane.b32.xlu0 %v1246_v8, %s1602_s22  ;;  %v662_v5 = vcombine.high %v2065_v59, %v2065_v59  ;;  %v876_v49 = vcombine.high %v2089_v27, %v2089_v27  ;;  %v529_v59 = vrot.slane %v450_v63, %v1753_v37  ;;  %v874_v48 = vcombine.high %v2071_v6, %v2071_v6 }
  0xb4   : > { %v811_v33 = vadd.f32 %v2306_v55, %v599_v53  ;;  %v810_v42 = vadd.f32 %v2307_v9, %v598_v40  ;;  %v1248_v26 = vadd.f32 %v2062_v61, %v1036_v7  ;;  %v1249_v10 = vadd.f32 %v1233_v39, %v1037_v51 }
  0xb5   : > { %v352_v44 = vpop.permute.xlu1 %351  ;;  %v348_v41 = vpop.permute.xlu0 %347  ;;  %v1088_v27 = vcombine.high %v2092_v16, %v2092_v16  ;;  %v741_v47 = vrot.slane %v662_v5, %v1753_v37  ;;  %v1086_v6 = vcombine.high %v2097_v34, %v2097_v34  ;;  %v589_v30 = vmul.f32 %v533_v25, %v1780_v57  ;;  %v2310_v34 = vld [vmem:[#allocation8_spill] sm:$0xff] }
  0xb6   : > { %v1023_v20 = vadd.f32 %v1983_v2, %v811_v33  ;;  %v1022_v12 = vadd.f32 %v2308_v56, %v810_v42  ;;  %v601_v61 = vadd.f32 %v2010_v22, %v352_v44  ;;  %v600_v45 = vadd.f32 %v2041_v32, %v348_v41  ;;  %1277 = vrot.lane.b32.xlu1 %v1247_v50, %s1602_s22 }
  0xb7   : > { %1279 = vrot.lane.b32.xlu0 %v1248_v26, %s1602_s22  ;;  %v957_v16 = vrot.slane %v876_v49, %v1753_v37  ;;  %v588_v13 = vmul.f32 %v529_v59, %v1780_v57  ;;  %v953_v21 = vrot.slane %v874_v48, %v1753_v37  ;;  %v801_v57 = vmul.f32 %v745_v46, %v1788_v62 }
  0xb8   : > { %v1235_v2 = vadd.f32 %v1986_v52, %v1023_v20  ;;  %v1234_v22 = vadd.f32 %v1989_v58, %v1022_v12  ;;  %v813_v32 = vadd.f32 %v2309_v0, %v601_v61  ;;  %v812_v18 = vadd.f32 %v2044_v11, %v600_v45 }
  0xb9   : > { %v360_v60 = vpop.permute.xlu1 %359  ;;  %v356_v36 = vpop.permute.xlu0 %355  ;;  %v1169_v11 = vrot.slane %v1088_v27, %v1753_v37  ;;  %v1013_v53 = vmul.f32 %v957_v16, %v1797_v3  ;;  %v1012_v51 = vmul.f32 %v953_v21, %v1797_v3 }
  0xba   : > { %v1025_v54 = vadd.f32 %v2310_v34, %v813_v32  ;;  %v1024_v52 = vadd.f32 %v2047_v4, %v812_v18  ;;  %v603_v58 = vadd.f32 %v2115_v43, %v360_v60  ;;  %v602_v31 = vadd.f32 %v2086_v14, %v356_v36  ;;  %1281 = vrot.lane.b32.xlu1 %v1249_v10, %s1602_s22  ;;  %v2311_v43 = vld [vmem:[#allocation9_spill] sm:$0xff] }
  0xbb   : > { %1251 = vst.msk [vmem:[%s2207_s12] sm:$0xff] %vm1250_vm0, %v1234_v22  ;;  %1252 = vst.msk [vmem:[%s2207_s12 + $0x8] sm:$0xff] %vm1250_vm0, %v1235_v2  ;;  %v800_v4 = vmul.f32 %v741_v47, %v1788_v62  ;;  %v1165_v14 = vrot.slane %v1086_v6, %v1753_v37 }
  0xbc   : > { %v1237_v8 = vadd.f32 %v2311_v43, %v1025_v54  ;;  %v1236_v38 = vadd.f32 %v2312_v24, %v1024_v52  ;;  %v815_v28 = vadd.f32 %v2136_v17, %v603_v58  ;;  %v814_v63 = vadd.f32 %v2122_v29, %v602_v31 }
  0xbd   : > { %v368_v7 = vpop.permute.xlu1 %367  ;;  %v364_v40 = vpop.permute.xlu0 %363  ;;  %v1225_v29 = vmul.f32 %v1169_v11, %v1900_v1  ;;  %v1224_v17 = vmul.f32 %v1165_v14, %v1900_v1 }
  0xbe   : > { %v1027_v62 = vadd.f32 %v2146_v15, %v815_v28  ;;  %v1026_v37 = vadd.f32 %v2131_v23, %v814_v63  ;;  %v605_v39 = vadd.f32 %v589_v30, %v368_v7  ;;  %v604_v25 = vadd.f32 %v588_v13, %v364_v40  ;;  %1253 = vst.msk [vmem:[%s2207_s12 + $0x10] sm:$0xff] %vm1250_vm0, %v1236_v38 }
  0xbf   : > { %1254 = vst.msk [vmem:[%s2207_s12 + $0x18] sm:$0xff] %vm1250_vm0, %v1237_v8 }
  0xc0   : > { %v1239_v3 = vadd.f32 %v2160_v19, %v1027_v62  ;;  %v1238_v15 = vadd.f32 %v2149_v35, %v1026_v37  ;;  %v817_v5 = vadd.f32 %v801_v57, %v605_v39  ;;  %v816_v23 = vadd.f32 %v800_v4, %v604_v25 }
  0xc2   : > { %v1029_v55 = vadd.f32 %v1013_v53, %v817_v5  ;;  %v1028_v33 = vadd.f32 %v1012_v51, %v816_v23  ;;  %1255 = vst.msk [vmem:[%s2207_s12 + $0x20] sm:$0xff] %vm1250_vm0, %v1238_v15  ;;  %1256 = vst.msk [vmem:[%s2207_s12 + $0x28] sm:$0xff] %vm1250_vm0, %v1239_v3 }
  0xc4   : > { %v1241_v9 = vadd.f32 %v1225_v29, %v1029_v55  ;;  %v1240_v42 = vadd.f32 %v1224_v17, %v1028_v33 }
  0xc6   : > { %1257 = vst.msk [vmem:[%s2207_s12 + $0x30] sm:$0xff] %vm1250_vm0, %v1240_v42  ;;  %1258 = vst.msk [vmem:[%s2207_s12 + $0x38] sm:$0xff] %vm1250_vm0, %v1241_v9 }
 0x11c   : > { %v1268_v1 = vpop.permute.xlu0 %1267 }
 0x11d   : > { %1292 = vst.msk [vmem:[%s2207_s12] sm:$0xff] %vm1291_vm1, %v1268_v1 }
 0x120   : > { %v1270_v35 = vpop.permute.xlu1 %1269  ;;  %v1272_v19 = vpop.permute.xlu0 %1271 }
 0x121   : > { %1293 = vst.msk [vmem:[%s2207_s12 + $0x8] sm:$0xff] %vm1291_vm1, %v1270_v35  ;;  %1294 = vst.msk [vmem:[%s2207_s12 + $0x10] sm:$0xff] %vm1291_vm1, %v1272_v19 }
 0x124   : > { %v1274_v50 = vpop.permute.xlu1 %1273  ;;  %v1353_v49 = vld [vmem:[%s2207_s12] sm:$0xff] (%p1671_p6) }
 0x125   : > { %1295 = vst.msk [vmem:[%s2207_s12 + $0x18] sm:$0xff] %vm1291_vm1, %v1274_v50  ;;  %v1276_v26 = vpop.permute.xlu0 %1275  ;;  %1354 = vst [vmem:[%s1310_s30] sm:$0xff] (%p1671_p6), %v1353_v49 }
 0x126   : > { %1296 = vst.msk [vmem:[%s2207_s12 + $0x20] sm:$0xff] %vm1291_vm1, %v1276_v26 }
 0x128   : > { %v1278_v44 = vpop.permute.xlu1 %1277  ;;  %v1355_v59 = vld [vmem:[%s2207_s12 + $0x8] sm:$0xff] (%p1671_p6)  ;;  %v1357_v48 = vld [vmem:[%s2207_s12 + $0x10] sm:$0xff] (%p1671_p6) }
 0x129   : > { %1297 = vst.msk [vmem:[%s2207_s12 + $0x28] sm:$0xff] %vm1291_vm1, %v1278_v44  ;;  %v1280_v41 = vpop.permute.xlu0 %1279  ;;  %1306 = sbr.rel (!%p1671_p6) target bundleno = 310 (0x136), region = 74  ;;  %1356 = vst [vmem:[%s1310_s30 + $0x10] sm:$0xff] (%p1671_p6), %v1355_v59 }
 0x12a   : > { %1298 = vst.msk [vmem:[%s2207_s12 + $0x30] sm:$0xff] %vm1291_vm1, %v1280_v41  ;;  %1358 = vst [vmem:[%s1310_s30 + $0x20] sm:$0xff] (%p1671_p6), %v1357_v48 }
 0x12c   : > { %v1282_v46 = vpop.permute.xlu1 %1281  ;;  %v1359_v20 = vld [vmem:[%s2207_s12 + $0x18] sm:$0xff] (%p1671_p6) }
 0x12d   : > { %1299 = vst.msk [vmem:[%s2207_s12 + $0x38] sm:$0xff] %vm1291_vm1, %v1282_v46  ;;  %v1361_v56 = vld [vmem:[%s2207_s12 + $0x20] sm:$0xff] (%p1671_p6)  ;;  %1360 = vst [vmem:[%s1310_s30 + $0x30] sm:$0xff] (%p1671_p6), %v1359_v20 }
 0x12e   : > { %1362 = vst [vmem:[%s1310_s30 + $0x40] sm:$0xff] %v1361_v56 }
 0x130   : > { %v1363_v12 = vld [vmem:[%s2207_s12 + $0x28] sm:$0xff] }
 0x131   : > { %v1365_v61 = vld [vmem:[%s2207_s12 + $0x30] sm:$0xff]  ;;  %1364 = vst [vmem:[%s1310_s30 + $0x50] sm:$0xff] %v1363_v12 }
 0x132   : > { %1366 = vst [vmem:[%s1310_s30 + $0x60] sm:$0xff] %v1365_v61 }
 0x134   : > { %v1367_v45 = vld [vmem:[%s2207_s12 + $0x38] sm:$0xff] }
 0x135   : > { %1368 = vst [vmem:[%s1310_s30 + $0x70] sm:$0xff] %v1367_v45 }
 0x136 PF: > { %s13_s18 = sadd.s32 1, %s1598_s18   ;;  %s2313_s12 = smov %s1578_s13 }
 0x137   : > { %p10_p12 = scmp.ge.s32.totalorder %s13_s18, 6   ;;  %s2314_s13 = smov %s1679_s27 }
 0x138   : > { %s2315_s14 = smov %s1590_s16  ;;  %s2316_s15 = smov %s1594_s17 }
 0x139   : > { %s2317_s16 = smov %s2320_s19  ;;  %s2318_s17 = smov %s2324_s20 }
 0x13a   :  { %12 = sbr.rel (!%p10_p12) target bundleno = 4 (0x4), region = 143 }

</bundles_post_ra>
